<compile_context>
chip_gen: v6e
topology: v6e:2x2x1
jax: 0.10.0
libtpu: 0.0.40
codegen_flags: <defaults>
</compile_context>

<pallas_src>
import functools

import jax
import jax.numpy as jnp
from jax import lax
from jax.experimental import pallas as pl
from jax.experimental.pallas import tpu as pltpu


def _round_up(x, m):
    return ((x + m - 1) // m) * m


# ---------------------------------------------------------------------------
# Best-effort hardware queries (safe fallbacks; never raise).
# ---------------------------------------------------------------------------
def _tpu_vmem_capacity_bytes():
    try:
        info = pltpu.get_tpu_info()
        for attr in ("vmem_capacity_bytes", "vmem_bytes", "vmem_size_bytes"):
            v = getattr(info, attr, None)
            if isinstance(v, int) and v > 0:
                return v
    except Exception:
        pass
    return 64 * 1024 * 1024  # conservative: v7x physical VMEM per TC


def _tpu_num_tensorcores():
    try:
        info = pltpu.get_tpu_info()
        for attr in ("num_tensorcores", "tensorcore_count", "num_cores", "core_count"):
            v = getattr(info, attr, None)
            if isinstance(v, int) and v > 0:
                return v
    except Exception:
        pass
    return 1  # v5e/v6e: single TensorCore per chip


def _vmem_limit_bytes(needed_bytes, cap_bytes):
    limit = int(needed_bytes * 1.25) + (2 << 20)   # 25% + 2 MiB headroom
    limit = max(limit, 16 << 20)                   # floor: scoped default on v5e
    limit = min(limit, cap_bytes)                  # never ask above physical
    return int(limit)


# ---------------------------------------------------------------------------
# Tile-size selection helpers.
# ---------------------------------------------------------------------------
def _pick_col_block(g, limit=1024):
    """Largest multiple-of-128 divisor of g (=3*Hp) that is <= limit."""
    best = 128
    c = 128
    top = min(limit, g)
    while c <= top:
        if g % c == 0:
            best = c
        c += 128
    return best


def _pick_row_block(tp, bp, target=512):
    """row_block = bp * rt with rt | tp and bp*rt <= max(bp, target)."""
    rt = 1
    cap = max(bp, target)
    for d in range(1, tp + 1):
        if tp % d == 0 and bp * d <= cap:
            rt = d
    return bp * rt


def _choose_time_block(seq_len, b_blk, hp, budget_bytes, cap=64):
    """Pick TT so double-buffered GI + c slabs plus single-buffered W_h fit VMEM.
    Prefer a TT that divides seq_len (no padded steps -> no mask on the hot path)."""
    per_t = b_blk * 3 * hp * 4 * 2 + b_blk * hp * 4 * 2      # GI (2x) + c (2x)
    fixed = hp * 3 * hp * 4 + 8 * hp * 4 + 3 * b_blk * hp * 4  # wh + bhn + hn/carry
    avail = budget_bytes - fixed
    tt_max = max(1, avail // per_t) if avail > per_t else 1
    tt = int(min(seq_len, tt_max, cap))
    best_div = 1
    for d in range(1, tt + 1):
        if seq_len % d == 0:
            best_div = d
    if best_div * 2 >= tt:      # dividing TT not much smaller -> drop padding entirely
        return best_div
    return tt


# ---------------------------------------------------------------------------
# Kernel 1: input projection (fully parallel grid: columns outer, rows inner).
#   GI = X @ Wi_fused + (b_ih with b_hr/b_hz folded in)     -> (rows, 3*Hp) f32
# The weight block (Dp, TN) stays resident across the inner row sweep; being
# effectively grid-invariant there, it is single-buffered (pl.Buffered(1)).
# ---------------------------------------------------------------------------
def _input_proj_kernel(x_ref, wi_ref, bi_ref, gi_ref):
    gi_ref[...] = (
        jnp.dot(x_ref[...], wi_ref[...], preferred_element_type=jnp.float32)
        + bi_ref[...]
    )


def _input_projection(x2d, wi, bi, *, row_block, col_block, vmem_cap):
    rows, d_in = x2d.shape
    g = wi.shape[1]  # 3 * Hp
    n_rows = rows // row_block
    n_cols = g // col_block

    needed = (2 * row_block * d_in * 4          # x block (double-buffered)
              + d_in * col_block * 4            # wi block (Buffered(1))
              + 8 * col_block * 4               # bias (Buffered(1), sublane-padded)
              + 2 * row_block * col_block * 4)  # GI out block (double-buffered)

    return pl.pallas_call(
        _input_proj_kernel,
        out_shape=jax.ShapeDtypeStruct((rows, g), jnp.float32),
        grid_spec=pltpu.PrefetchScalarGridSpec(
            num_scalar_prefetch=0,
            grid=(n_cols, n_rows),
            in_specs=[
                pl.BlockSpec((row_block, d_in), lambda n, r: (r, 0)),
                pl.BlockSpec((d_in, col_block), lambda n, r: (0, n),
                             pipeline_mode=pl.Buffered(1)),
                pl.BlockSpec((1, col_block), lambda n, r: (0, n),
                             pipeline_mode=pl.Buffered(1)),
            ],
            out_specs=pl.BlockSpec((row_block, col_block), lambda n, r: (r, n)),
        ),
        compiler_params=pltpu.CompilerParams(
            dimension_semantics=("parallel", "parallel"),
            vmem_limit_bytes=_vmem_limit_bytes(needed, vmem_cap),
        ),
    )(x2d, wi, bi)


# ---------------------------------------------------------------------------
# Kernel 2: recurrence. Grid = (batch_blocks [parallel], time_blocks [arbitrary]).
# Each grid step processes TT timesteps with an inner fori_loop; per step only one
# fused (Bblk, Hp) @ (Hp, 3Hp) matmul sits on the serial h_{t-1} -> h_t chain.
# The padding mask only exists on the last time block (pl.when), and only when
# the sequence length does not divide into TT blocks.
# ---------------------------------------------------------------------------
def _gru_recurrent_kernel(gi_ref, wh_ref, bhn_ref, c_ref, hn_ref, h_carry,
                          *, seq_len, padded, unroll):
    t_blk = pl.program_id(1)          # time axis (inner, sequential)
    tt = c_ref.shape[0]
    bblk = hn_ref.shape[0]
    hp = hn_ref.shape[-1]

    @pl.when(t_blk == 0)
    def _():
        # PyTorch GRU default initial hidden state is zeros.
        h_carry[...] = jnp.zeros_like(h_carry)

    wh = wh_ref[...]                                    # (Hp, 3*Hp), loop-invariant
    # Hoist the (1,Hp)->(Bblk,Hp) broadcast out of the step loop (no CSE in-loop).
    b_hn = pl.broadcast_to(bhn_ref[...], (bblk, hp))
    t0 = t_blk * tt

    def make_step(apply_mask):
        def step(i, h):
            gi = gi_ref[i]                              # (Bblk, 3*Hp) precomputed
            gh = jnp.dot(h, wh, preferred_element_type=jnp.float32)
            r = jax.nn.sigmoid(gi[:, 0:hp] + gh[:, 0:hp])
            zg = jax.nn.sigmoid(gi[:, hp:2 * hp] + gh[:, hp:2 * hp])
            n = jnp.tanh(gi[:, 2 * hp:3 * hp] + r * (gh[:, 2 * hp:3 * hp] + b_hn))
            h_new = n + zg * (h - n)                    # == (1-z)*n + z*h
            if apply_mask:
                # Padded time steps (t >= seq_len) must not advance the state.
                keep = ((t0 + i) < seq_len).astype(jnp.float32)
                h_new = h + keep * (h_new - h)
            c_ref[i] = h_new.astype(c_ref.dtype)        # row into (TT, Bblk, Hp) slab
            return h_new
        return step

    def run(apply_mask):
        h_last = lax.fori_loop(0, tt, make_step(apply_mask), h_carry[...],
                               unroll=unroll)
        h_carry[...] = h_last

    if padded:
        is_last = t_blk == pl.num_programs(1) - 1
        @pl.when(jnp.logical_not(is_last))
        def _():
            run(False)                                  # full blocks: no mask ops

        @pl.when(is_last)
        def _():
            run(True)                                   # only the ragged tail masks
    else:
        run(False)

    @pl.when(t_blk == pl.num_programs(1) - 1)
    def _():
        hn_ref[...] = h_carry[...].astype(hn_ref.dtype)


def _gru_recurrence(gi, wh, bhn, *, seq_len, tt, batch_block, out_dtype, vmem_cap):
    tp, bp, g = gi.shape
    hp = wh.shape[0]
    n_t = tp // tt
    n_b = bp // batch_block
    padded = tp != seq_len
    # Unroll gives the LLO scheduler visibility; cap it so the live vreg set
    # (gi + gh + gate temporaries) does not spill at larger Bblk/Hp.
    unroll = True if tt <= 16 else 8

    needed = (2 * tt * batch_block * g * 4       # GI block (double-buffered)
              + 2 * tt * batch_block * hp * 4    # c output block (double-buffered)
              + hp * g * 4                        # wh (Buffered(1))
              + 8 * hp * 4                        # b_hn (Buffered(1))
              + 2 * batch_block * hp * 4          # h_n output block
              + batch_block * hp * 4)             # h carry scratch

    kernel = functools.partial(
        _gru_recurrent_kernel, seq_len=seq_len, padded=padded, unroll=unroll)

    c, h_n = pl.pallas_call(
        kernel,
        out_shape=(
            jax.ShapeDtypeStruct((tp, bp, hp), out_dtype),
            jax.ShapeDtypeStruct((bp, hp), out_dtype),
        ),
        grid_spec=pltpu.PrefetchScalarGridSpec(
            num_scalar_prefetch=0,
            grid=(n_b, n_t),
            in_specs=[
                pl.BlockSpec((tt, batch_block, g), lambda b, t: (t, b, 0)),   # GI slab
                pl.BlockSpec((hp, g), lambda b, t: (0, 0),                    # W_h fused
                             pipeline_mode=pl.Buffered(1)),
                pl.BlockSpec((1, hp), lambda b, t: (0, 0),                    # b_hn
                             pipeline_mode=pl.Buffered(1)),
            ],
            out_specs=[
                pl.BlockSpec((tt, batch_block, hp), lambda b, t: (t, b, 0)),  # c slab
                pl.BlockSpec((batch_block, hp), lambda b, t: (b, 0)),         # h_n
            ],
            scratch_shapes=[pltpu.VMEM((batch_block, hp), jnp.float32)],      # h carry
        ),
        compiler_params=pltpu.CompilerParams(
            dimension_semantics=("parallel", "arbitrary"),
            vmem_limit_bytes=_vmem_limit_bytes(needed, vmem_cap),
        ),
    )(gi, wh, bhn)
    return c, h_n


# ---------------------------------------------------------------------------
# Parameter packing: fuse gates (r, z, n) along the lane axis, fold b_hr/b_hz
# into the input-side bias, and zero-pad to (in_pad, 3*h_pad) / (h_pad, 3*h_pad).
# ---------------------------------------------------------------------------
def _pack_layer_params(p, in_pad, h_pad):
    def pad2(w, rows, cols):
        return jnp.pad(w, ((0, rows - w.shape[0]), (0, cols - w.shape[1])))

    def pad1(v):
        return jnp.pad(v, (0, h_pad - v.shape[0]))

    wi = jnp.concatenate(
        [pad2(p["wir"], in_pad, h_pad),
         pad2(p["wiz"], in_pad, h_pad),
         pad2(p["win"], in_pad, h_pad)], axis=1)                 # (in_pad, 3*h_pad)
    wh = jnp.concatenate(
        [pad2(p["whr"], h_pad, h_pad),
         pad2(p["whz"], h_pad, h_pad),
         pad2(p["whn"], h_pad, h_pad)], axis=1)                  # (h_pad, 3*h_pad)
    bi = jnp.concatenate(
        [pad1(p["bih"][0] + p["bhh"][0]),     # r: b_ir + b_hr (fold-able)
         pad1(p["bih"][1] + p["bhh"][1]),     # z: b_iz + b_hz (fold-able)
         pad1(p["bih"][2])])[None, :]         # n: b_in only
    bhn = pad1(p["bhh"][2])[None, :]          # b_hn stays inside r * (...)
    return wi, wh, bi, bhn


# ---------------------------------------------------------------------------
# Public forward: z [batch, seq, input_dim] -> (c [B,T,H], h_n [num_layers,B,H])
# ---------------------------------------------------------------------------
def context_network_forward(z, layer_params, *, time_block=64,
                            num_tensorcores=None, vmem_budget_bytes=None):
    B, T, D = z.shape
    H = layer_params[0]["whr"].shape[0]

    # Lane/sublane-friendly padded sizes.
    Hp = _round_up(H, 128)
    Dp = _round_up(D, 128)

    cores = num_tensorcores if num_tensorcores is not None else _tpu_num_tensorcores()
    vmem_cap = _tpu_vmem_capacity_bytes()
    budget = (vmem_budget_bytes if vmem_budget_bytes is not None
              else int(0.7 * vmem_cap))

    # Only split the batch across "parallel" blocks when a second TensorCore
    # exists (v7x); on single-TC chips one big M block fills the MXU better and
    # halves the serial grid-step count.
    if cores >= 2 and B > 8:
        b_blk = _round_up(-(-B // 2), 8)
        n_b = 2
    else:
        b_blk = _round_up(B, 8)
        n_b = 1
    Bp = n_b * b_blk

    # Derive TT from the VMEM budget (fits v7x 64 MiB and v5e/v6e defaults);
    # prefer TT | T so no time-padding mask is ever compiled on full blocks.
    TT = _choose_time_block(T, b_blk, Hp, budget, cap=time_block)
    n_t = -(-T // TT)
    Tp = n_t * TT

    x = jnp.transpose(z, (1, 0, 2))                               # time-major (T,B,D)
    x = jnp.pad(x, ((0, Tp - T), (0, Bp - B), (0, Dp - D)))       # (Tp, Bp, Dp)

    finals = []
    for p in layer_params:
        in_pad = x.shape[-1]
        wi, wh, bi, bhn = _pack_layer_params(p, in_pad, Hp)

        # Input projection: row tile ~512 rows, column axis over 3*Hp.
        row_block = _pick_row_block(Tp, Bp)
        col_block = _pick_col_block(3 * Hp)
        gi = _input_projection(x.reshape(Tp * Bp, in_pad), wi, bi,
                               row_block=row_block, col_block=col_block,
                               vmem_cap=vmem_cap)
        gi = gi.reshape(Tp, Bp, 3 * Hp)
        # NOTE: with n_b=2 a (n_b, Tp, Bblk, 3Hp) transposed GI layout would make
        # each core's per-step fetch fully contiguous; the per-timestep chunks are
        # already dense (Bblk*3Hp*4 bytes), so the transpose is not paid here.

        x, h_n = _gru_recurrence(gi, wh, bhn, seq_len=T, tt=TT,
                                 batch_block=b_blk, out_dtype=z.dtype,
                                 vmem_cap=vmem_cap)
        finals.append(h_n[:B, :H])

    c = jnp.transpose(x[:T, :B, :H], (1, 0, 2))   # back to batch_first, unpadded
    h_n = jnp.stack(finals, axis=0)
    return c, h_n


# ---------------------------------------------------------------------------
# Parameter init (PyTorch-style U(-1/sqrt(H), 1/sqrt(H)); weights pre-transposed
# to (in_features, H) per gate) and a pure-JAX reference for correctness.
# ---------------------------------------------------------------------------
def init_gru_params(key, input_dim, hidden_dim, num_layers, dtype=jnp.float32):
    k = 1.0 / jnp.sqrt(jnp.array(hidden_dim, dtype=jnp.float32))
    params = []
    for layer in range(num_layers):
        in_dim = input_dim if layer == 0 else hidden_dim
        key, *subkeys = jax.random.split(key, 9)
        u = lambda sk, shape: jax.random.uniform(sk, shape, dtype, -k, k)
        params.append({
            "wir": u(subkeys[0], (in_dim, hidden_dim)),
            "wiz": u(subkeys[1], (in_dim, hidden_dim)),
            "win": u(subkeys[2], (in_dim, hidden_dim)),
            "whr": u(subkeys[3], (hidden_dim, hidden_dim)),
            "whz": u(subkeys[4], (hidden_dim, hidden_dim)),
            "whn": u(subkeys[5], (hidden_dim, hidden_dim)),
            "bih": u(subkeys[6], (3, hidden_dim)),   # rows: [b_ir, b_iz, b_in]
            "bhh": u(subkeys[7], (3, hidden_dim)),   # rows: [b_hr, b_hz, b_hn]
        })
    return params


def _reference_forward(z, layer_params):
    def layer(x_tm, p):
        def step(h, x_t):
            gi_r = x_t @ p["wir"] + p["bih"][0]
            gi_z = x_t @ p["wiz"] + p["bih"][1]
            gi_n = x_t @ p["win"] + p["bih"][2]
            gh_r = h @ p["whr"] + p["bhh"][0]
            gh_z = h @ p["whz"] + p["bhh"][1]
            gh_n = h @ p["whn"] + p["bhh"][2]
            r = jax.nn.sigmoid(gi_r + gh_r)
            zg = jax.nn.sigmoid(gi_z + gh_z)
            n = jnp.tanh(gi_n + r * gh_n)
            h_new = (1.0 - zg) * n + zg * h
            return h_new, h_new
        Bb = x_tm.shape[1]
        Hh = p["whr"].shape[0]
        h0 = jnp.zeros((Bb, Hh), x_tm.dtype)
        h_last, ys = jax.lax.scan(step, h0, x_tm)
        return ys, h_last

    x = jnp.transpose(z, (1, 0, 2))
    finals = []
    for p in layer_params:
        x, h_n = layer(x, p)
        finals.append(h_n)
    return jnp.transpose(x, (1, 0, 2)), jnp.stack(finals, axis=0)


if __name__ == "__main__":
    batch, seq_len, input_dim = 2, 8, 32
    hidden_dim, num_layers = 32, 2

    key = jax.random.PRNGKey(0)
    key_z, key_p = jax.random.split(key)
    z = jax.random.normal(key_z, (batch, seq_len, input_dim), jnp.float32)
    layer_params = init_gru_params(key_p, input_dim, hidden_dim, num_layers)

    c, h_n = context_network_forward(z, layer_params)
    c = jax.block_until_ready(c)
    h_n = jax.block_until_ready(h_n)

    assert c.shape == (batch, seq_len, hidden_dim), c.shape
    assert h_n.shape == (num_layers, batch, hidden_dim), h_n.shape

    c_ref, h_ref = _reference_forward(z, layer_params)
    assert jnp.allclose(c, c_ref, atol=2e-5, rtol=2e-5), float(jnp.abs(c - c_ref).max())
    assert jnp.allclose(h_n, h_ref, atol=2e-5, rtol=2e-5), float(jnp.abs(h_n - h_ref).max())

    print("KERNEL_OK")
</pallas_src>

<mosaic_0001>
module attributes {stable_mosaic.version = 11 : i64} {
  func.func @_input_proj_kernel(%arg0: i32, %arg1: i32, %arg2: memref<64x128xf32, #tpu.memory_space<vmem>>, %arg3: memref<128x384xf32, #tpu.memory_space<vmem>>, %arg4: memref<1x384xf32, #tpu.memory_space<vmem>>, %arg5: memref<64x384xf32, #tpu.memory_space<vmem>>) attributes {dimension_semantics = [#tpu.dimension_semantics<parallel>, #tpu.dimension_semantics<parallel>], iteration_bounds = array<i64: 1, 1>, scalar_prefetch = 0 : i64, scratch_operands = 0 : i64, tpu.core_type = #tpu.core_type<tc>, window_params = [{transform_indices = @transform_0, window_bounds = array<i64: 64, 128>}, {pipeline_mode = #tpu.pipeline_mode<synchronous>, transform_indices = @transform_1, window_bounds = array<i64: 128, 384>}, {pipeline_mode = #tpu.pipeline_mode<synchronous>, transform_indices = @transform_2, window_bounds = array<i64: 1, 384>}, {transform_indices = @transform_3, window_bounds = array<i64: 64, 384>}]} {
    %c0 = arith.constant 0 : index
    %c0_0 = arith.constant 0 : index
    %0 = vector.load %arg2[%c0, %c0_0] : memref<64x128xf32, #tpu.memory_space<vmem>>, vector<64x128xf32>
    %c0_1 = arith.constant 0 : index
    %c0_2 = arith.constant 0 : index
    %1 = vector.load %arg3[%c0_1, %c0_2] : memref<128x384xf32, #tpu.memory_space<vmem>>, vector<128x384xf32>
    %cst = arith.constant dense<0.000000e+00> : vector<64x384xf32>
    %2 = tpu.matmul %0, %1, %cst {dimension_numbers = #tpu.dot_dimension_numbers<[1], [0], [0], [1], [0, 0, 1, 1], [], []>} : vector<64x128xf32>, vector<128x384xf32>, vector<64x384xf32> -> vector<64x384xf32>
    %c0_3 = arith.constant 0 : index
    %c0_4 = arith.constant 0 : index
    %3 = vector.load %arg4[%c0_3, %c0_4] : memref<1x384xf32, #tpu.memory_space<vmem>>, vector<1x384xf32>
    %4 = vector.broadcast %3 : vector<1x384xf32> to vector<64x384xf32>
    %5 = arith.addf %2, %4 : vector<64x384xf32>
    %c0_5 = arith.constant 0 : index
    %c0_6 = arith.constant 0 : index
    %6 = vector.load %arg5[%c0_5, %c0_6] : memref<64x384xf32, #tpu.memory_space<vmem>>, vector<64x384xf32>
    tpu.vector_store %arg5[%c0_5, %c0_6], %5 {strides = array<i32>} : memref<64x384xf32, #tpu.memory_space<vmem>>, vector<64x384xf32>,
    return
  }
  func.func @transform_0(%arg0: i32, %arg1: i32) -> (i32, i32) {
    %c0_i32 = arith.constant 0 : i32
    %c0_i32_0 = arith.constant 0 : i32
    return %arg1, %c0_i32 : i32, i32
  }
  func.func @transform_1(%arg0: i32, %arg1: i32) -> (i32, i32) {
    %c0_i32 = arith.constant 0 : i32
    %c0_i32_0 = arith.constant 0 : i32
    return %c0_i32, %arg0 : i32, i32
  }
  func.func @transform_2(%arg0: i32, %arg1: i32) -> (i32, i32) {
    %c0_i32 = arith.constant 0 : i32
    %c0_i32_0 = arith.constant 0 : i32
    return %c0_i32, %arg0 : i32, i32
  }
  func.func @transform_3(%arg0: i32, %arg1: i32) -> (i32, i32) {
    %c0_i32 = arith.constant 0 : i32
    return %arg1, %arg0 : i32, i32
  }
}

</mosaic_0001>

<bundles_post_ra>
// kernel: tpu_custom_call.1
= control target key start
LH: loop header
LB: loop body
LE: loop exit
PB: predicated region body
PF: predicated region fallthrough
CT: control target
= control target key end

     0   :  { %8 = vsyncpa [#allocation3], 0  ;;  %s592_s0 = inlined_call_operand.hbm [shape: f32[64,128], index: 0, kind: input, shape index: {}]   ;;  %s593_s1 = inlined_call_operand.hbm [shape: f32[128,384], index: 1, kind: input, shape index: {}]   ;;  %s594_s2 = inlined_call_operand.vmem [shape: f32[1,384], index: 2, kind: input, shape index: {}]   ;;  %s595_s3 = inlined_call_operand.hbm [shape: f32[64,384], index: 3, kind: output, shape index: {}]  }
   0x1   :  { %9 = vsyncpa [#allocation6], 0 }
   0x2   :  { %10 = vsyncpa [#allocation4], 0  ;;  %s518_s12 = smov [#allocation2]  }
   0x3   :  { %s16_s13 = sshll.u32 %s518_s12, 4  ;;  %s17_s13 = int_to_ptr.vmem [resolvable:$true] %s16_s13 }
   0x4   :  { %s460_s14 = scalar_lea.vmem %s17_s13, 1024  ;;  %p465_p1 = scmp.lt.s32.totalorder %s17_s13, %s17_s13 }
   0x5   :  { %p461_p0 = scmp.ne.s32.totalorder %s17_s13, %s460_s14  ;;  %p466_p2 = scmp.lt.s32.totalorder %s460_s14, %s460_s14 }
   0x7   :  { %p467_p3 = por %p466_p2, %p465_p1 }
   0x9   :  { %p468_p4 = pnand %p467_p3, %p461_p0 }
   0xb   :  { %471 = shalt.err (!%p468_p4)
}
   0xc   :  { %s519_s15 = smov 128   ;;  %s520_s16 = smov 8  }
   0xd   :  { %22 = dma.hbm_to_vmem [thread:$0]  %s592_s0, 1024, %s17_s13, [#allocation3], %s519_s15, %s519_s15, %s520_s16  }
   0xe   :  { %s521_s19 = smov [#allocation5]  }
   0xf   :  { %s28_s20 = sshll.u32 %s521_s19, 4  ;;  %s29_s20 = int_to_ptr.vmem [resolvable:$true] %s28_s20 }
  0x10   :  { %s480_s21 = scalar_lea.vmem %s29_s20, 6144  ;;  %p485_p6 = scmp.lt.s32.totalorder %s29_s20, %s29_s20 }
  0x11   :  { %p481_p5 = scmp.ne.s32.totalorder %s29_s20, %s480_s21  ;;  %p486_p7 = scmp.lt.s32.totalorder %s480_s21, %s480_s21 }
  0x13   :  { %p487_p8 = por %p486_p7, %p485_p6 }
  0x15   :  { %p488_p9 = pnand %p487_p8, %p481_p5 }
  0x17   :  { %491 = shalt.err (!%p488_p9)
}
  0x18   :  { %s522_s22 = smov 384   ;;  %s523_s23 = smov 24  }
  0x19   :  { %34 = dma.hbm_to_vmem [thread:$0]  %s593_s1, 6144, %s29_s20, [#allocation6], %s522_s22, %s522_s22, %s523_s23  }
  0x1a   :  { %512 = dma.done.wait [#allocation3], 1024  }
  0x1b   :  { %513 = vsyncadd [#allocation3], 4294966272 }
  0x1c   :  { %514 = dma.done.wait [#allocation6], 6144  }
  0x1d   :  { %515 = vsyncadd [#allocation6], 4294961152  ;;  %v524_v0 = vmov 0.0   ;;  %v97_v1 = vld [vmem:[#allocation5 + $0x170] sm:$0xff]  ;;  %v96_v2 = vld [vmem:[#allocation5 + $0x168] sm:$0xff]  ;;  %v101_v57 = vlaneseq }
  0x1e   :  { %180 = vmatprep.mubr.f32.mxu0 %v524_v0  ;;  %v94_v3 = vld [vmem:[#allocation5 + $0x158] sm:$0xff]  ;;  %116 = vmatprep.subr.mxu0 %v97_v1  ;;  %v93_v4 = vld [vmem:[#allocation5 + $0x150] sm:$0xff]  ;;  %v91_v5 = vld [vmem:[#allocation5 + $0x140] sm:$0xff] }
  0x1f   :  { %117 = vmatpush1.msra.mxu0 %v96_v2  ;;  %v90_v6 = vld [vmem:[#allocation5 + $0x138] sm:$0xff]  ;;  %v88_v7 = vld [vmem:[#allocation5 + $0x128] sm:$0xff]  ;;  %v87_v8 = vld [vmem:[#allocation5 + $0x120] sm:$0xff]  ;;  %v102_v58 = vshrl.u32 %v101_v57, 7 }
  0x20   :  { %118 = vmatprep.subr.mxu0 %v94_v3  ;;  %v98_v9 = vld [vmem:[#allocation5 + $0x178] sm:$0xff]  ;;  %v85_v10 = vld [vmem:[#allocation5 + $0x110] sm:$0xff]  ;;  %v95_v11 = vld [vmem:[#allocation5 + $0x160] sm:$0xff] }
  0x21   :  { %119 = vmatpush1.msra.mxu0 %v93_v4  ;;  %400 = vmatprep.subr.mxu1 %v98_v9  ;;  %v84_v12 = vld [vmem:[#allocation5 + $0x108] sm:$0xff]  ;;  %v82_v14 = vld [vmem:[#allocation5 + $0xf8] sm:$0xff]  ;;  %v81_v15 = vld [vmem:[#allocation5 + $0xf0] sm:$0xff]  ;;  %v103_v59 = vsub.s32 0, %v102_v58  ;;  %v107_v61 = vsub.s32 1, %v102_v58  ;;  %v111_v63 = vsub.s32 2, %v102_v58 }
  0x22   :  { %120 = vmatprep.subr.mxu0 %v91_v5  ;;  %401 = vmatpush3.msra.mxu1 %v98_v9  ;;  %v92_v13 = vld [vmem:[#allocation5 + $0x148] sm:$0xff]  ;;  %v89_v16 = vld [vmem:[#allocation5 + $0x130] sm:$0xff]  ;;  %v79_v17 = vld [vmem:[#allocation5 + $0xe0] sm:$0xff] }
  0x23   :  { %121 = vmatpush1.msra.mxu0 %v90_v6  ;;  %402 = vmatprep.subr.mxu1 %v95_v11  ;;  %v78_v18 = vld [vmem:[#allocation5 + $0xd8] sm:$0xff]  ;;  %v76_v20 = vld [vmem:[#allocation5 + $0xc8] sm:$0xff]  ;;  %v75_v21 = vld [vmem:[#allocation5 + $0xc0] sm:$0xff] }
  0x24   :  { %122 = vmatprep.subr.mxu0 %v88_v7  ;;  %403 = vmatpush3.msra.mxu1 %v95_v11  ;;  %v86_v19 = vld [vmem:[#allocation5 + $0x118] sm:$0xff]  ;;  %v83_v22 = vld [vmem:[#allocation5 + $0x100] sm:$0xff]  ;;  %v73_v23 = vld [vmem:[#allocation5 + $0xb0] sm:$0xff] }
  0x25   :  { %123 = vmatpush1.msra.mxu0 %v87_v8  ;;  %404 = vmatprep.subr.mxu1 %v92_v13  ;;  %v72_v24 = vld [vmem:[#allocation5 + $0xa8] sm:$0xff]  ;;  %v70_v26 = vld [vmem:[#allocation5 + $0x98] sm:$0xff]  ;;  %v69_v27 = vld [vmem:[#allocation5 + $0x90] sm:$0xff] }
  0x26   :  { %124 = vmatprep.subr.mxu0 %v85_v10  ;;  %405 = vmatpush3.msra.mxu1 %v92_v13  ;;  %v80_v25 = vld [vmem:[#allocation5 + $0xe8] sm:$0xff]  ;;  %v77_v28 = vld [vmem:[#allocation5 + $0xd0] sm:$0xff]  ;;  %v67_v29 = vld [vmem:[#allocation5 + $0x80] sm:$0xff] }
  0x27   :  { %125 = vmatpush1.msra.mxu0 %v84_v12  ;;  %406 = vmatprep.subr.mxu1 %v89_v16  ;;  %v66_v30 = vld [vmem:[#allocation5 + $0x78] sm:$0xff]  ;;  %v64_v32 = vld [vmem:[#allocation5 + $0x68] sm:$0xff]  ;;  %v63_v33 = vld [vmem:[#allocation5 + $0x60] sm:$0xff] }
  0x28   :  { %126 = vmatprep.subr.mxu0 %v82_v14  ;;  %407 = vmatpush3.msra.mxu1 %v89_v16  ;;  %v74_v31 = vld [vmem:[#allocation5 + $0xb8] sm:$0xff]  ;;  %v71_v34 = vld [vmem:[#allocation5 + $0xa0] sm:$0xff]  ;;  %v61_v35 = vld [vmem:[#allocation5 + $0x50] sm:$0xff] }
  0x29   :  { %127 = vmatpush1.msra.mxu0 %v81_v15  ;;  %408 = vmatprep.subr.mxu1 %v86_v19  ;;  %v60_v36 = vld [vmem:[#allocation5 + $0x48] sm:$0xff]  ;;  %v58_v38 = vld [vmem:[#allocation5 + $0x38] sm:$0xff]  ;;  %v57_v39 = vld [vmem:[#allocation5 + $0x30] sm:$0xff] }
  0x2a   :  { %128 = vmatprep.subr.mxu0 %v79_v17  ;;  %409 = vmatpush3.msra.mxu1 %v86_v19  ;;  %v68_v37 = vld [vmem:[#allocation5 + $0x88] sm:$0xff]  ;;  %v65_v40 = vld [vmem:[#allocation5 + $0x70] sm:$0xff]  ;;  %v55_v41 = vld [vmem:[#allocation5 + $0x20] sm:$0xff] }
  0x2b   :  { %129 = vmatpush1.msra.mxu0 %v78_v18  ;;  %410 = vmatprep.subr.mxu1 %v83_v22  ;;  %v54_v42 = vld [vmem:[#allocation5 + $0x18] sm:$0xff]  ;;  %v52_v44 = vld [vmem:[#allocation5 + $0x8] sm:$0xff]  ;;  %v51_v45 = vld [vmem:[#allocation5] sm:$0xff] }
  0x2c   :  { %130 = vmatprep.subr.mxu0 %v76_v20  ;;  %411 = vmatpush3.msra.mxu1 %v83_v22  ;;  %v62_v43 = vld [vmem:[#allocation5 + $0x58] sm:$0xff]  ;;  %v59_v46 = vld [vmem:[#allocation5 + $0x40] sm:$0xff]  ;;  %v56_v48 = vld [vmem:[#allocation5 + $0x28] sm:$0xff] }
  0x2d   :  { %131 = vmatpush1.msra.mxu0 %v75_v21  ;;  %412 = vmatprep.subr.mxu1 %v80_v25  ;;  %v43_v47 = vld [vmem:[#allocation2] sm:$0xff]  ;;  %v53_v49 = vld [vmem:[#allocation5 + $0x10] sm:$0xff]  ;;  %v44_v50 = vld [vmem:[#allocation2 + $0x8] sm:$0xff] }
  0x2e   :  { %132 = vmatprep.subr.mxu0 %v73_v23  ;;  %413 = vmatpush3.msra.mxu1 %v80_v25  ;;  %v45_v51 = vld [vmem:[#allocation2 + $0x10] sm:$0xff]  ;;  %v46_v52 = vld [vmem:[#allocation2 + $0x18] sm:$0xff]  ;;  %v47_v53 = vld [vmem:[#allocation2 + $0x20] sm:$0xff] }
  0x2f   :  { %133 = vmatpush1.msra.mxu0 %v72_v24  ;;  %414 = vmatprep.subr.mxu1 %v77_v28  ;;  %v49_v54 = vld [vmem:[#allocation2 + $0x30] sm:$0xff]  ;;  %v48_v55 = vld [vmem:[#allocation2 + $0x28] sm:$0xff]  ;;  %v50_v56 = vld [vmem:[#allocation2 + $0x38] sm:$0xff] }
  0x30   :  { %134 = vmatprep.subr.mxu0 %v70_v26  ;;  %415 = vmatpush3.msra.mxu1 %v77_v28  ;;  %v99_v60 = vld [vmem:[%s594_s2] sm:$0x7]  ;;  %s525_s2 = smov [#allocation7]  }
  0x31   :  { %135 = vmatpush1.msra.mxu0 %v69_v27  ;;  %416 = vmatprep.subr.mxu1 %v74_v31  ;;  %v566_v62 = vrot.slane %v99_v60, %v103_v59  ;;  %v568_v1 = vrot.slane %v99_v60, %v107_v61  ;;  %v112_v5 = vrot.slane %v99_v60, %v111_v63  ;;  %s363_s26 = sshll.u32 %s525_s2, 4  ;;  %s364_s26 = int_to_ptr.vmem [resolvable:$true] %s363_s26 }
  0x32   :  { %136 = vmatprep.subr.mxu0 %v67_v29  ;;  %417 = vmatpush3.msra.mxu1 %v74_v31  ;;  %s492_s27 = scalar_lea.vmem %s364_s26, 3072  ;;  %p497_p11 = scmp.lt.s32.totalorder %s364_s26, %s364_s26 }
  0x33   :  { %137 = vmatpush1.msra.mxu0 %v66_v30  ;;  %418 = vmatprep.subr.mxu1 %v71_v34  ;;  %p493_p10 = scmp.ne.s32.totalorder %s364_s26, %s492_s27  ;;  %p498_p12 = scmp.lt.s32.totalorder %s492_s27, %s492_s27 }
  0x34   :  { %138 = vmatprep.subr.mxu0 %v64_v32  ;;  %419 = vmatpush3.msra.mxu1 %v71_v34 }
  0x35   :  { %139 = vmatpush1.msra.mxu0 %v63_v33  ;;  %420 = vmatprep.subr.mxu1 %v68_v37  ;;  %p499_p13 = por %p498_p12, %p497_p11 }
  0x36   :  { %140 = vmatprep.subr.mxu0 %v61_v35  ;;  %421 = vmatpush3.msra.mxu1 %v68_v37 }
  0x37   :  { %141 = vmatpush1.msra.mxu0 %v60_v36  ;;  %422 = vmatprep.subr.mxu1 %v65_v40  ;;  %p500_p0 = pnand %p499_p13, %p493_p10 }
  0x38   :  { %142 = vmatprep.subr.mxu0 %v58_v38  ;;  %423 = vmatpush3.msra.mxu1 %v65_v40 }
  0x39   :  { %143 = vmatpush1.msra.mxu0 %v57_v39  ;;  %424 = vmatprep.subr.mxu1 %v62_v43 }
  0x3a   :  { %144 = vmatprep.subr.mxu0 %v55_v41  ;;  %425 = vmatpush3.msra.mxu1 %v62_v43 }
  0x3b   :  { %145 = vmatpush1.msra.mxu0 %v54_v42  ;;  %426 = vmatprep.subr.mxu1 %v59_v46 }
  0x3c   :  { %146 = vmatprep.subr.mxu0 %v52_v44  ;;  %427 = vmatpush3.msra.mxu1 %v59_v46 }
  0x3d   :  { %147 = vmatpush1.msra.mxu0 %v51_v45  ;;  %428 = vmatprep.subr.mxu1 %v56_v48 }
  0x3e   :  { %181 = vmatmul.mubr.f32.vlgmr.msra.gmra.mxu0 %v43_v47  ;;  %429 = vmatpush3.msra.mxu1 %v56_v48 }
  0x3f   :  { %186 = vmatprep.mubr.f32.mxu0 %v524_v0  ;;  %432 = vmatprep.mubr.f32.mxu1 %v43_v47 }
  0x40   :  { %430 = vmatprep.subr.mxu1 %v53_v49 }
  0x41   :  { %431 = vmatpush3.msra.mxu1 %v53_v49 }
  0x42   :  { %187 = vmatmul.mubr.f32.gmra.mxu0 %v44_v50  ;;  %433 = vmatmul.mubr.f32.vlgmr.msra.gmra.mxu1 %v44_v50 }
  0x43   :  { %192 = vmatprep.mubr.f32.mxu0 %v524_v0  ;;  %435 = vmatprep.mubr.f32.mxu1 %v45_v51 }
  0x46   :  { %193 = vmatmul.mubr.f32.gmra.mxu0 %v45_v51  ;;  %436 = vmatmul.mubr.f32.gmra.mxu1 %v46_v52 }
  0x47   :  { %198 = vmatprep.mubr.f32.mxu0 %v524_v0  ;;  %438 = vmatprep.mubr.f32.mxu1 %v47_v53 }
  0x4a   :  { %199 = vmatmul.mubr.f32.gmra.mxu0 %v46_v52  ;;  %439 = vmatmul.mubr.f32.gmra.mxu1 %v48_v55 }
  0x4b   :  { %204 = vmatprep.mubr.f32.mxu0 %v524_v0  ;;  %441 = vmatprep.mubr.f32.mxu1 %v49_v54 }
  0x4e   :  { %205 = vmatmul.mubr.f32.gmra.mxu0 %v47_v53  ;;  %442 = vmatmul.mubr.f32.gmra.mxu1 %v50_v56 }
  0x4f   :  { %210 = vmatprep.mubr.f32.mxu0 %v524_v0 }
  0x52   :  { %211 = vmatmul.mubr.f32.gmra.mxu0 %v48_v55 }
  0x53   :  { %216 = vmatprep.mubr.f32.mxu0 %v524_v0 }
  0x56   :  { %217 = vmatmul.mubr.f32.gmra.mxu0 %v49_v54 }
  0x57   :  { %222 = vmatprep.mubr.f32.mxu0 %v524_v0 }
  0x5a   :  { %223 = vmatmul.mubr.f32.gmra.mxu0 %v50_v56 }
  0xfe   :  { %v182_v2 = vpop.f32.mrf.mxu0 }
  0xff   :  { %v183_v3 = vadd.f32 %v182_v2, %v566_v62 }
 0x100   :  { %v184_v4 = vpop.f32.mrf.mxu0 }
 0x101   :  { %334 = vst [vmem:[#allocation7] sm:$0xff] %v183_v3  ;;  %v185_v0 = vadd.f32 %v184_v4, %v568_v1 }
 0x102   :  { %v188_v6 = vpop.f32.mrf.mxu0  ;;  %v434_v8 = vpop.f32.mrf.mxu1 }
 0x103   :  { %335 = vst [vmem:[#allocation7 + $0x8] sm:$0xff] %v185_v0  ;;  %v189_v7 = vadd.f32 %v188_v6, %v566_v62  ;;  %v301_v10 = vadd.f32 %v434_v8, %v112_v5 }
 0x104   :  { %v190_v9 = vpop.f32.mrf.mxu0  ;;  %v295_v12 = vpop.f32.mrf.mxu1 }
 0x105   :  { %337 = vst [vmem:[#allocation7 + $0x18] sm:$0xff] %v189_v7  ;;  %v191_v11 = vadd.f32 %v190_v9, %v568_v1  ;;  %339 = vst [vmem:[#allocation7 + $0x28] sm:$0xff] %v301_v10  ;;  %v296_v14 = vadd.f32 %v295_v12, %v112_v5 }
 0x106   :  { %v194_v13 = vpop.f32.mrf.mxu0  ;;  %v437_v16 = vpop.f32.mrf.mxu1 }
 0x107   :  { %338 = vst [vmem:[#allocation7 + $0x20] sm:$0xff] %v191_v11  ;;  %v195_v15 = vadd.f32 %v194_v13, %v566_v62  ;;  %336 = vst [vmem:[#allocation7 + $0x10] sm:$0xff] %v296_v14  ;;  %v311_v18 = vadd.f32 %v437_v16, %v112_v5 }
 0x108   :  { %v196_v17 = vpop.f32.mrf.mxu0  ;;  %v305_v20 = vpop.f32.mrf.mxu1 }
 0x109   :  { %340 = vst [vmem:[#allocation7 + $0x30] sm:$0xff] %v195_v15  ;;  %v197_v19 = vadd.f32 %v196_v17, %v568_v1  ;;  %345 = vst [vmem:[#allocation7 + $0x58] sm:$0xff] %v311_v18  ;;  %v306_v22 = vadd.f32 %v305_v20, %v112_v5 }
 0x10a   :  { %v200_v21 = vpop.f32.mrf.mxu0  ;;  %v440_v24 = vpop.f32.mrf.mxu1 }
 0x10b   :  { %341 = vst [vmem:[#allocation7 + $0x38] sm:$0xff] %v197_v19  ;;  %v201_v23 = vadd.f32 %v200_v21, %v566_v62  ;;  %342 = vst [vmem:[#allocation7 + $0x40] sm:$0xff] %v306_v22  ;;  %v321_v26 = vadd.f32 %v440_v24, %v112_v5 }
 0x10c   :  { %v202_v25 = vpop.f32.mrf.mxu0  ;;  %v315_v28 = vpop.f32.mrf.mxu1 }
 0x10d   :  { %343 = vst [vmem:[#allocation7 + $0x48] sm:$0xff] %v201_v23  ;;  %v203_v27 = vadd.f32 %v202_v25, %v568_v1  ;;  %351 = vst [vmem:[#allocation7 + $0x88] sm:$0xff] %v321_v26  ;;  %v316_v30 = vadd.f32 %v315_v28, %v112_v5 }
 0x10e   :  { %v206_v29 = vpop.f32.mrf.mxu0  ;;  %v443_v32 = vpop.f32.mrf.mxu1 }
 0x10f   :  { %344 = vst [vmem:[#allocation7 + $0x50] sm:$0xff] %v203_v27  ;;  %v207_v31 = vadd.f32 %v206_v29, %v566_v62  ;;  %348 = vst [vmem:[#allocation7 + $0x70] sm:$0xff] %v316_v30  ;;  %v331_v34 = vadd.f32 %v443_v32, %v112_v5 }
 0x110   :  { %v208_v33 = vpop.f32.mrf.mxu0  ;;  %v325_v36 = vpop.f32.mrf.mxu1 }
 0x111   :  { %346 = vst [vmem:[#allocation7 + $0x60] sm:$0xff] %v207_v31  ;;  %v209_v35 = vadd.f32 %v208_v33, %v568_v1  ;;  %357 = vst [vmem:[#allocation7 + $0xb8] sm:$0xff] %v331_v34  ;;  %v326_v38 = vadd.f32 %v325_v36, %v112_v5 }
 0x112   :  { %v212_v37 = vpop.f32.mrf.mxu0 }
 0x113   :  { %347 = vst [vmem:[#allocation7 + $0x68] sm:$0xff] %v209_v35  ;;  %v213_v39 = vadd.f32 %v212_v37, %v566_v62  ;;  %354 = vst [vmem:[#allocation7 + $0xa0] sm:$0xff] %v326_v38 }
 0x114   :  { %v214_v40 = vpop.f32.mrf.mxu0 }
 0x115   :  { %349 = vst [vmem:[#allocation7 + $0x78] sm:$0xff] %v213_v39  ;;  %v215_v41 = vadd.f32 %v214_v40, %v568_v1 }
 0x116   :  { %v218_v42 = vpop.f32.mrf.mxu0 }
 0x117   :  { %350 = vst [vmem:[#allocation7 + $0x80] sm:$0xff] %v215_v41  ;;  %v219_v43 = vadd.f32 %v218_v42, %v566_v62 }
 0x118   :  { %v220_v44 = vpop.f32.mrf.mxu0 }
 0x119   :  { %352 = vst [vmem:[#allocation7 + $0x90] sm:$0xff] %v219_v43  ;;  %v221_v45 = vadd.f32 %v220_v44, %v568_v1 }
 0x11a   :  { %v224_v46 = vpop.f32.mrf.mxu0 }
 0x11b   :  { %353 = vst [vmem:[#allocation7 + $0x98] sm:$0xff] %v221_v45  ;;  %v225_v47 = vadd.f32 %v224_v46, %v566_v62 }
 0x11c   :  { %v226_v48 = vpop.f32.mrf.mxu0 }
 0x11d   :  { %355 = vst [vmem:[#allocation7 + $0xa8] sm:$0xff] %v225_v47  ;;  %v227_v49 = vadd.f32 %v226_v48, %v568_v1 }
 0x11f   :  { %356 = vst [vmem:[#allocation7 + $0xb0] sm:$0xff] %v227_v49 }
 0x120   :  { %503 = shalt.err (!%p500_p0)
}
 0x121   :  { %369 = dma.vmem_to_hbm [thread:$0]  %s364_s26, 3072, %s595_s3, [#allocation4], %s522_s22, %s522_s22, %s523_s23  }
 0x122   :  { %516 = dma.done.wait [#allocation4], 3072  }
 0x123   :  { %517 = vsyncadd [#allocation4], 4294964224 }
 0x124   :  { %373 = vsyncpa [#allocation3], 1 }
 0x125   :  { %374 = vsyncpa [#allocation6], 1 }
 0x126   :  { %375 = vsyncpa [#allocation4], 1 }

</bundles_post_ra>
